<compile_context>
chip_gen: v5e
topology: v5e:2x2
jax: 0.10.0
libtpu: 0.0.40
codegen_flags: <defaults>
</compile_context>

<pallas_src>
import jax
import jax.numpy as jnp
from jax.experimental import pallas as pl
from jax.experimental.pallas import tpu as pltpu  # noqa: F401  (kept for TPU-specific tuning hooks)

HIDDEN = 32     # hidden_size
VOCAB = 40      # output_size
MAX_LEN = 8     # max_length (encoder_outputs rows)


def attn_decoder_kernel(emb_ref, h0_ref, enc_ref,
                        atw_ref, atb_ref, cmw_ref, cmb_ref,
                        grw_ref, grb_ref, ow_ref, ob_ref,
                        logp_ref, newh_ref, attnw_ref):
    """Whole teacher-forced decode in one invocation; hidden carried as a value."""
    H = HIDDEN
    T = emb_ref.shape[0]
    f32 = jnp.float32

    # Hoist tiny loop-invariant values (a few vregs). Weight matrices stay in VMEM
    # and are re-read each step to avoid register spills (per perf review).
    emb_all = emb_ref[...]          # (T, H) embedded tokens (gathered in wrapper)
    enc = enc_ref[...]              # (L, H) encoder outputs
    ab = atb_ref[...]               # (1, L) attn bias
    cb = cmb_ref[...]               # (1, H) attn_combine bias
    b_r = grb_ref[0:1, :]           # (1, H) b_ir + b_hr
    b_z = grb_ref[1:2, :]           # (1, H) b_iz + b_hz
    b_in = grb_ref[2:3, :]          # (1, H) b_in
    b_hn = grb_ref[3:4, :]          # (1, H) b_hn
    ob = ob_ref[...]                # (1, V) output bias

    h = h0_ref[...]                 # (1, H) carried hidden state

    for t in range(T):              # fully unrolled decode loop (T is small & static)
        e_t = emb_all[t:t + 1, :]                                        # (1, H)

        # --- attention weights: softmax(attn([emb, h])) ---
        alog = (jnp.dot(e_t, atw_ref[0:H, :], preferred_element_type=f32)
                + jnp.dot(h, atw_ref[H:2 * H, :], preferred_element_type=f32)
                + ab)                                                    # (1, L)
        amax = jnp.max(alog, axis=1, keepdims=True)
        aexp = jnp.exp(alog - amax)
        aw_t = aexp / jnp.sum(aexp, axis=1, keepdims=True)               # (1, L)
        attnw_ref[t:t + 1, :] = aw_t

        # --- apply attention ---
        ctx = jnp.dot(aw_t, enc, preferred_element_type=f32)             # (1, H)

        # --- attn_combine + relu ---
        x = (jnp.dot(e_t, cmw_ref[0:H, :], preferred_element_type=f32)
             + jnp.dot(ctx, cmw_ref[H:2 * H, :], preferred_element_type=f32)
             + cb)
        x = jnp.maximum(x, 0.0)                                          # (1, H)

        # --- GRU cell (PyTorch gate order r, z, n); per-gate (H,H) matmuls,
        #     no lane slices and no contraction-dim padding ---
        r = jax.nn.sigmoid(
            jnp.dot(x, grw_ref[0:H, :], preferred_element_type=f32)
            + jnp.dot(h, grw_ref[3 * H:4 * H, :], preferred_element_type=f32)
            + b_r)
        z = jax.nn.sigmoid(
            jnp.dot(x, grw_ref[H:2 * H, :], preferred_element_type=f32)
            + jnp.dot(h, grw_ref[4 * H:5 * H, :], preferred_element_type=f32)
            + b_z)
        n = jnp.tanh(
            jnp.dot(x, grw_ref[2 * H:3 * H, :], preferred_element_type=f32)
            + b_in
            + r * (jnp.dot(h, grw_ref[5 * H:6 * H, :], preferred_element_type=f32)
                   + b_hn))
        h = (1.0 - z) * n + z * h                                        # (1, H)

        # --- output projection + log_softmax ---
        logits = jnp.dot(h, ow_ref[...], preferred_element_type=f32) + ob  # (1, V)
        lmax = jnp.max(logits, axis=1, keepdims=True)
        shifted = logits - lmax
        logp_ref[t:t + 1, :] = shifted - jnp.log(
            jnp.sum(jnp.exp(shifted), axis=1, keepdims=True))

    # final hidden written once after the loop
    newh_ref[...] = h


def _pack_params(params):
    """Repack weights into kernel-friendly transposed/stacked arrays (natural widths)."""
    H, L, V = HIDDEN, MAX_LEN, VOCAB
    f = lambda a: a.astype(jnp.float32)
    attn_w = f(params["attn_w"])        # (L, 2H)
    comb_w = f(params["comb_w"])        # (H, 2H)
    wih = f(params["gru_w_ih"])         # (3H, H) rows = [r; z; n]
    whh = f(params["gru_w_hh"])         # (3H, H)
    bih = f(params["gru_b_ih"])         # (3H,)
    bhh = f(params["gru_b_hh"])         # (3H,)

    atw = jnp.concatenate([attn_w[:, :H].T, attn_w[:, H:].T], axis=0)    # (2H, L)
    atb = f(params["attn_b"]).reshape(1, L)
    cmw = jnp.concatenate([comb_w[:, :H].T, comb_w[:, H:].T], axis=0)    # (2H, H)
    cmb = f(params["comb_b"]).reshape(1, H)
    grw = jnp.concatenate([wih[0:H].T, wih[H:2 * H].T, wih[2 * H:].T,
                           whh[0:H].T, whh[H:2 * H].T, whh[2 * H:].T],
                          axis=0)                                        # (6H, H)
    grb = jnp.stack([bih[0:H] + bhh[0:H],          # r bias (pre-summed)
                     bih[H:2 * H] + bhh[H:2 * H],  # z bias (pre-summed)
                     bih[2 * H:3 * H],             # input-side n bias
                     bhh[2 * H:3 * H]], axis=0)    # hidden-side n bias (scaled by r)
    ow = f(params["out_w"]).T                                            # (H, V)
    ob = f(params["out_b"]).reshape(1, V)
    return atw, atb, cmw, cmb, grw, grb, ow, ob


def attn_decoder_decode(tokens, hidden, encoder_outputs, params):
    """Fused T-step decode (teacher forcing).

    tokens: int32 (T,); hidden: (1,1,H); encoder_outputs: (L,H).
    Returns (log_probs (T,V), final hidden (1,1,H), attn weights (T,L)).
    """
    H, V, L = HIDDEN, VOCAB, MAX_LEN
    tokens = tokens.astype(jnp.int32).reshape(-1)
    T = int(tokens.shape[0])

    emb_seq = params["embedding"].astype(jnp.float32)[tokens]            # (T, H) wrapper gather
    h0 = hidden.astype(jnp.float32).reshape(1, H)
    enc = encoder_outputs.astype(jnp.float32)                            # (L, H)
    atw, atb, cmw, cmb, grw, grb, ow, ob = _pack_params(params)

    per_step_flops = 2 * (2 * H * L + L * H + 2 * H * H + 6 * H * H + H * V)
    cost = pl.CostEstimate(
        flops=int(per_step_flops * T),
        transcendentals=int((L + V + 3 * H + 4) * T),
        bytes_accessed=int(4 * (atw.size + cmw.size + grw.size + ow.size
                                + emb_seq.size + enc.size + T * (V + L) + 4 * H)),
    )

    # No grid: every array is a whole-block resident VMEM ref; the decode loop runs
    # inside the kernel and outputs are flushed to HBM once at the end.
    logp, new_h, attnw = pl.pallas_call(
        attn_decoder_kernel,
        out_shape=(
            jax.ShapeDtypeStruct((T, V), jnp.float32),
            jax.ShapeDtypeStruct((1, H), jnp.float32),
            jax.ShapeDtypeStruct((T, L), jnp.float32),
        ),
        cost_estimate=cost,
    )(emb_seq, h0, enc, atw, atb, cmw, cmb, grw, grb, ow, ob)

    return logp, new_h.reshape(1, 1, H), attnw


def attn_decoder_forward(token, hidden, encoder_outputs, params):
    """Single step — exact semantics of AttnDecoderRNN.forward (eval mode)."""
    logp, new_h, aw = attn_decoder_decode(token.reshape(1), hidden, encoder_outputs, params)
    return logp, new_h, aw


def reference_decode(tokens, hidden, encoder_outputs, params):
    """Pure-JAX reference: the PyTorch forward applied step by step (eval mode)."""
    H = HIDDEN
    h = hidden.reshape(1, H)
    logps, aws = [], []
    for t in range(tokens.shape[0]):
        emb = params["embedding"][tokens[t]].reshape(1, H)
        attn_logits = jnp.concatenate([emb, h], 1) @ params["attn_w"].T + params["attn_b"]
        aw = jax.nn.softmax(attn_logits, axis=1)
        attn_applied = aw @ encoder_outputs
        x = jnp.concatenate([emb, attn_applied], 1) @ params["comb_w"].T + params["comb_b"]
        x = jax.nn.relu(x)
        gi = x @ params["gru_w_ih"].T + params["gru_b_ih"]
        gh = h @ params["gru_w_hh"].T + params["gru_b_hh"]
        i_r, i_z, i_n = gi[:, :H], gi[:, H:2 * H], gi[:, 2 * H:]
        h_r, h_z, h_n = gh[:, :H], gh[:, H:2 * H], gh[:, 2 * H:]
        r = jax.nn.sigmoid(i_r + h_r)
        z = jax.nn.sigmoid(i_z + h_z)
        n = jnp.tanh(i_n + r * h_n)
        h = (1 - z) * n + z * h
        logits = h @ params["out_w"].T + params["out_b"]
        logps.append(jax.nn.log_softmax(logits, axis=1))
        aws.append(aw)
    return jnp.concatenate(logps, 0), h.reshape(1, 1, H), jnp.concatenate(aws, 0)


def init_params(key):
    H, V, L = HIDDEN, VOCAB, MAX_LEN
    ks = jax.random.split(key, 12)
    u = lambda k, shp, fan_in: jax.random.uniform(
        k, shp, jnp.float32, -1.0 / jnp.sqrt(fan_in), 1.0 / jnp.sqrt(fan_in))
    return {
        "embedding": jax.random.normal(ks[0], (V, H), jnp.float32) * 0.1,
        "attn_w": u(ks[1], (L, 2 * H), 2 * H),
        "attn_b": u(ks[2], (L,), 2 * H),
        "comb_w": u(ks[3], (H, 2 * H), 2 * H),
        "comb_b": u(ks[4], (H,), 2 * H),
        "gru_w_ih": u(ks[5], (3 * H, H), H),
        "gru_w_hh": u(ks[6], (3 * H, H), H),
        "gru_b_ih": u(ks[7], (3 * H,), H),
        "gru_b_hh": u(ks[8], (3 * H,), H),
        "out_w": u(ks[9], (V, H), H),
        "out_b": u(ks[10], (V,), H),
    }


if __name__ == "__main__":
    key = jax.random.PRNGKey(0)
    kp, kh, ke, kt = jax.random.split(key, 4)
    params = init_params(kp)

    T = 8
    tokens = jax.random.randint(kt, (T,), 0, VOCAB, dtype=jnp.int32)
    hidden = jax.random.normal(kh, (1, 1, HIDDEN), jnp.float32) * 0.1
    encoder_outputs = jax.random.normal(ke, (MAX_LEN, HIDDEN), jnp.float32) * 0.1

    tol = dict(atol=5e-3, rtol=5e-3)   # covers MXU default-precision f32 matmuls

    # 1) single step — identical semantics to AttnDecoderRNN.forward
    logp1, h1, aw1 = attn_decoder_forward(tokens[:1], hidden, encoder_outputs, params)
    jax.block_until_ready((logp1, h1, aw1))
    r_logp1, r_h1, r_aw1 = reference_decode(tokens[:1], hidden, encoder_outputs, params)
    assert jnp.allclose(logp1, r_logp1, **tol)
    assert jnp.allclose(h1, r_h1, **tol)
    assert jnp.allclose(aw1, r_aw1, **tol)

    # 2) fused T-step decode (teacher forcing) in a single pallas_call
    logp, hT, aw = attn_decoder_decode(tokens, hidden, encoder_outputs, params)
    jax.block_until_ready((logp, hT, aw))
    r_logp, r_hT, r_aw = reference_decode(tokens, hidden, encoder_outputs, params)
    assert jnp.allclose(logp, r_logp, **tol)
    assert jnp.allclose(hT, r_hT, **tol)
    assert jnp.allclose(aw, r_aw, **tol)

    print("KERNEL_OK")
</pallas_src>

<mosaic_0001>
module attributes {stable_mosaic.version = 11 : i64} {
  func.func @attn_decoder_kernel(%arg0: memref<1x32xf32, #tpu.memory_space<vmem>>, %arg1: memref<1x32xf32, #tpu.memory_space<vmem>>, %arg2: memref<8x32xf32, #tpu.memory_space<vmem>>, %arg3: memref<64x8xf32, #tpu.memory_space<vmem>>, %arg4: memref<1x8xf32, #tpu.memory_space<vmem>>, %arg5: memref<64x32xf32, #tpu.memory_space<vmem>>, %arg6: memref<1x32xf32, #tpu.memory_space<vmem>>, %arg7: memref<192x32xf32, #tpu.memory_space<vmem>>, %arg8: memref<4x32xf32, #tpu.memory_space<vmem>>, %arg9: memref<32x40xf32, #tpu.memory_space<vmem>>, %arg10: memref<1x40xf32, #tpu.memory_space<vmem>>, %arg11: memref<1x40xf32, #tpu.memory_space<vmem>>, %arg12: memref<1x32xf32, #tpu.memory_space<vmem>>, %arg13: memref<1x8xf32, #tpu.memory_space<vmem>>) attributes {dimension_semantics = [], scalar_prefetch = 0 : i64, scratch_operands = 0 : i64, tpu.core_type = #tpu.core_type<tc>} {
    %c0 = arith.constant 0 : index
    %c0_0 = arith.constant 0 : index
    %0 = vector.load %arg0[%c0, %c0_0] : memref<1x32xf32, #tpu.memory_space<vmem>>, vector<1x32xf32>
    %c0_1 = arith.constant 0 : index
    %c0_2 = arith.constant 0 : index
    %1 = vector.load %arg2[%c0_1, %c0_2] : memref<8x32xf32, #tpu.memory_space<vmem>>, vector<8x32xf32>
    %c0_3 = arith.constant 0 : index
    %c0_4 = arith.constant 0 : index
    %2 = vector.load %arg4[%c0_3, %c0_4] : memref<1x8xf32, #tpu.memory_space<vmem>>, vector<1x8xf32>
    %c0_5 = arith.constant 0 : index
    %c0_6 = arith.constant 0 : index
    %3 = vector.load %arg6[%c0_5, %c0_6] : memref<1x32xf32, #tpu.memory_space<vmem>>, vector<1x32xf32>
    %c0_7 = arith.constant 0 : index
    %c0_8 = arith.constant 0 : index
    %4 = vector.load %arg8[%c0_7, %c0_8] : memref<4x32xf32, #tpu.memory_space<vmem>>, vector<1x32xf32>
    %c1 = arith.constant 1 : index
    %c0_9 = arith.constant 0 : index
    %5 = vector.load %arg8[%c1, %c0_9] : memref<4x32xf32, #tpu.memory_space<vmem>>, vector<1x32xf32>
    %c2 = arith.constant 2 : index
    %c0_10 = arith.constant 0 : index
    %6 = vector.load %arg8[%c2, %c0_10] : memref<4x32xf32, #tpu.memory_space<vmem>>, vector<1x32xf32>
    %c3 = arith.constant 3 : index
    %c0_11 = arith.constant 0 : index
    %7 = vector.load %arg8[%c3, %c0_11] : memref<4x32xf32, #tpu.memory_space<vmem>>, vector<1x32xf32>
    %c0_12 = arith.constant 0 : index
    %c0_13 = arith.constant 0 : index
    %8 = vector.load %arg10[%c0_12, %c0_13] : memref<1x40xf32, #tpu.memory_space<vmem>>, vector<1x40xf32>
    %c0_14 = arith.constant 0 : index
    %c0_15 = arith.constant 0 : index
    %9 = vector.load %arg1[%c0_14, %c0_15] : memref<1x32xf32, #tpu.memory_space<vmem>>, vector<1x32xf32>
    %c0_16 = arith.constant 0 : index
    %c0_17 = arith.constant 0 : index
    %10 = vector.load %arg3[%c0_16, %c0_17] : memref<64x8xf32, #tpu.memory_space<vmem>>, vector<32x8xf32>
    %cst = arith.constant dense<0.000000e+00> : vector<1x8xf32>
    %11 = tpu.matmul %0, %10, %cst {dimension_numbers = #tpu.dot_dimension_numbers<[1], [0], [0], [1], [0, 0, 1, 1], [], []>} : vector<1x32xf32>, vector<32x8xf32>, vector<1x8xf32> -> vector<1x8xf32>
    %c32 = arith.constant 32 : index
    %c0_18 = arith.constant 0 : index
    %12 = vector.load %arg3[%c32, %c0_18] : memref<64x8xf32, #tpu.memory_space<vmem>>, vector<32x8xf32>
    %cst_19 = arith.constant dense<0.000000e+00> : vector<1x8xf32>
    %13 = tpu.matmul %9, %12, %cst_19 {dimension_numbers = #tpu.dot_dimension_numbers<[1], [0], [0], [1], [0, 0, 1, 1], [], []>} : vector<1x32xf32>, vector<32x8xf32>, vector<1x8xf32> -> vector<1x8xf32>
    %14 = arith.addf %11, %13 : vector<1x8xf32>
    %15 = arith.addf %14, %2 : vector<1x8xf32>
    %cst_20 = arith.constant dense<0xFF800000> : vector<1xf32>
    %16 = vector.multi_reduction <maximumf>, %15, %cst_20 [1] : vector<1x8xf32> to vector<1xf32>
    %17 = vector.shape_cast %16 : vector<1xf32> to vector<1x1xf32>
    %18 = vector.broadcast %17 : vector<1x1xf32> to vector<1x8xf32>
    %19 = arith.subf %15, %18 : vector<1x8xf32>
    %20 = math.exp %19 : vector<1x8xf32>
    %cst_21 = arith.constant dense<0.000000e+00> : vector<1xf32>
    %21 = vector.multi_reduction <add>, %20, %cst_21 [1] : vector<1x8xf32> to vector<1xf32>
    %22 = vector.shape_cast %21 : vector<1xf32> to vector<1x1xf32>
    %23 = vector.broadcast %22 : vector<1x1xf32> to vector<1x8xf32>
    %24 = arith.divf %20, %23 : vector<1x8xf32>
    %c0_22 = arith.constant 0 : index
    %c0_23 = arith.constant 0 : index
    %25 = vector.load %arg13[%c0_22, %c0_23] : memref<1x8xf32, #tpu.memory_space<vmem>>, vector<1x8xf32>
    tpu.vector_store %arg13[%c0_22, %c0_23], %24 {strides = array<i32>} : memref<1x8xf32, #tpu.memory_space<vmem>>, vector<1x8xf32>,
    %cst_24 = arith.constant dense<0.000000e+00> : vector<1x32xf32>
    %26 = tpu.matmul %24, %1, %cst_24 {dimension_numbers = #tpu.dot_dimension_numbers<[1], [0], [0], [1], [0, 0, 1, 1], [], []>} : vector<1x8xf32>, vector<8x32xf32>, vector<1x32xf32> -> vector<1x32xf32>
    %c0_25 = arith.constant 0 : index
    %c0_26 = arith.constant 0 : index
    %27 = vector.load %arg5[%c0_25, %c0_26] : memref<64x32xf32, #tpu.memory_space<vmem>>, vector<32x32xf32>
    %cst_27 = arith.constant dense<0.000000e+00> : vector<1x32xf32>
    %28 = tpu.matmul %0, %27, %cst_27 {dimension_numbers = #tpu.dot_dimension_numbers<[1], [0], [0], [1], [0, 0, 1, 1], [], []>} : vector<1x32xf32>, vector<32x32xf32>, vector<1x32xf32> -> vector<1x32xf32>
    %c32_28 = arith.constant 32 : index
    %c0_29 = arith.constant 0 : index
    %29 = vector.load %arg5[%c32_28, %c0_29] : memref<64x32xf32, #tpu.memory_space<vmem>>, vector<32x32xf32>
    %cst_30 = arith.constant dense<0.000000e+00> : vector<1x32xf32>
    %30 = tpu.matmul %26, %29, %cst_30 {dimension_numbers = #tpu.dot_dimension_numbers<[1], [0], [0], [1], [0, 0, 1, 1], [], []>} : vector<1x32xf32>, vector<32x32xf32>, vector<1x32xf32> -> vector<1x32xf32>
    %31 = arith.addf %28, %30 : vector<1x32xf32>
    %32 = arith.addf %31, %3 : vector<1x32xf32>
    %cst_31 = arith.constant 0.000000e+00 : f32
    %33 = vector.broadcast %cst_31 : f32 to vector<1x32xf32>
    %34 = arith.maximumf %32, %33 : vector<1x32xf32>
    %c0_32 = arith.constant 0 : index
    %c0_33 = arith.constant 0 : index
    %35 = vector.load %arg7[%c0_32, %c0_33] : memref<192x32xf32, #tpu.memory_space<vmem>>, vector<32x32xf32>
    %cst_34 = arith.constant dense<0.000000e+00> : vector<1x32xf32>
    %36 = tpu.matmul %34, %35, %cst_34 {dimension_numbers = #tpu.dot_dimension_numbers<[1], [0], [0], [1], [0, 0, 1, 1], [], []>} : vector<1x32xf32>, vector<32x32xf32>, vector<1x32xf32> -> vector<1x32xf32>
    %c96 = arith.constant 96 : index
    %c0_35 = arith.constant 0 : index
    %37 = vector.load %arg7[%c96, %c0_35] : memref<192x32xf32, #tpu.memory_space<vmem>>, vector<32x32xf32>
    %cst_36 = arith.constant dense<0.000000e+00> : vector<1x32xf32>
    %38 = tpu.matmul %9, %37, %cst_36 {dimension_numbers = #tpu.dot_dimension_numbers<[1], [0], [0], [1], [0, 0, 1, 1], [], []>} : vector<1x32xf32>, vector<32x32xf32>, vector<1x32xf32> -> vector<1x32xf32>
    %39 = arith.addf %36, %38 : vector<1x32xf32>
    %40 = arith.addf %39, %4 : vector<1x32xf32>
    %41 = arith.negf %40 : vector<1x32xf32>
    %42 = math.exp %41 : vector<1x32xf32>
    %cst_37 = arith.constant 1.000000e+00 : f32
    %43 = vector.broadcast %cst_37 : f32 to vector<1x32xf32>
    %44 = arith.addf %43, %42 : vector<1x32xf32>
    %45 = arith.divf %43, %44 : vector<1x32xf32>
    %c32_38 = arith.constant 32 : index
    %c0_39 = arith.constant 0 : index
    %46 = vector.load %arg7[%c32_38, %c0_39] : memref<192x32xf32, #tpu.memory_space<vmem>>, vector<32x32xf32>
    %cst_40 = arith.constant dense<0.000000e+00> : vector<1x32xf32>
    %47 = tpu.matmul %34, %46, %cst_40 {dimension_numbers = #tpu.dot_dimension_numbers<[1], [0], [0], [1], [0, 0, 1, 1], [], []>} : vector<1x32xf32>, vector<32x32xf32>, vector<1x32xf32> -> vector<1x32xf32>
    %c128 = arith.constant 128 : index
    %c0_41 = arith.constant 0 : index
    %48 = vector.load %arg7[%c128, %c0_41] : memref<192x32xf32, #tpu.memory_space<vmem>>, vector<32x32xf32>
    %cst_42 = arith.constant dense<0.000000e+00> : vector<1x32xf32>
    %49 = tpu.matmul %9, %48, %cst_42 {dimension_numbers = #tpu.dot_dimension_numbers<[1], [0], [0], [1], [0, 0, 1, 1], [], []>} : vector<1x32xf32>, vector<32x32xf32>, vector<1x32xf32> -> vector<1x32xf32>
    %50 = arith.addf %47, %49 : vector<1x32xf32>
    %51 = arith.addf %50, %5 : vector<1x32xf32>
    %52 = arith.negf %51 : vector<1x32xf32>
    %53 = math.exp %52 : vector<1x32xf32>
    %cst_43 = arith.constant 1.000000e+00 : f32
    %54 = vector.broadcast %cst_43 : f32 to vector<1x32xf32>
    %55 = arith.addf %54, %53 : vector<1x32xf32>
    %56 = arith.divf %54, %55 : vector<1x32xf32>
    %c64 = arith.constant 64 : index
    %c0_44 = arith.constant 0 : index
    %57 = vector.load %arg7[%c64, %c0_44] : memref<192x32xf32, #tpu.memory_space<vmem>>, vector<32x32xf32>
    %cst_45 = arith.constant dense<0.000000e+00> : vector<1x32xf32>
    %58 = tpu.matmul %34, %57, %cst_45 {dimension_numbers = #tpu.dot_dimension_numbers<[1], [0], [0], [1], [0, 0, 1, 1], [], []>} : vector<1x32xf32>, vector<32x32xf32>, vector<1x32xf32> -> vector<1x32xf32>
    %59 = arith.addf %58, %6 : vector<1x32xf32>
    %c160 = arith.constant 160 : index
    %c0_46 = arith.constant 0 : index
    %60 = vector.load %arg7[%c160, %c0_46] : memref<192x32xf32, #tpu.memory_space<vmem>>, vector<32x32xf32>
    %cst_47 = arith.constant dense<0.000000e+00> : vector<1x32xf32>
    %61 = tpu.matmul %9, %60, %cst_47 {dimension_numbers = #tpu.dot_dimension_numbers<[1], [0], [0], [1], [0, 0, 1, 1], [], []>} : vector<1x32xf32>, vector<32x32xf32>, vector<1x32xf32> -> vector<1x32xf32>
    %62 = arith.addf %61, %7 : vector<1x32xf32>
    %63 = arith.mulf %45, %62 : vector<1x32xf32>
    %64 = arith.addf %59, %63 : vector<1x32xf32>
    %65 = math.tanh %64 : vector<1x32xf32>
    %cst_48 = arith.constant 1.000000e+00 : f32
    %66 = vector.broadcast %cst_48 : f32 to vector<1x32xf32>
    %67 = arith.subf %66, %56 : vector<1x32xf32>
    %68 = arith.mulf %67, %65 : vector<1x32xf32>
    %69 = arith.mulf %56, %9 : vector<1x32xf32>
    %70 = arith.addf %68, %69 : vector<1x32xf32>
    %c0_49 = arith.constant 0 : index
    %c0_50 = arith.constant 0 : index
    %71 = vector.load %arg9[%c0_49, %c0_50] : memref<32x40xf32, #tpu.memory_space<vmem>>, vector<32x40xf32>
    %cst_51 = arith.constant dense<0.000000e+00> : vector<1x40xf32>
    %72 = tpu.matmul %70, %71, %cst_51 {dimension_numbers = #tpu.dot_dimension_numbers<[1], [0], [0], [1], [0, 0, 1, 1], [], []>} : vector<1x32xf32>, vector<32x40xf32>, vector<1x40xf32> -> vector<1x40xf32>
    %73 = arith.addf %72, %8 : vector<1x40xf32>
    %cst_52 = arith.constant dense<0xFF800000> : vector<1xf32>
    %74 = vector.multi_reduction <maximumf>, %73, %cst_52 [1] : vector<1x40xf32> to vector<1xf32>
    %75 = vector.shape_cast %74 : vector<1xf32> to vector<1x1xf32>
    %76 = vector.broadcast %75 : vector<1x1xf32> to vector<1x40xf32>
    %77 = arith.subf %73, %76 : vector<1x40xf32>
    %78 = math.exp %77 : vector<1x40xf32>
    %cst_53 = arith.constant dense<0.000000e+00> : vector<1xf32>
    %79 = vector.multi_reduction <add>, %78, %cst_53 [1] : vector<1x40xf32> to vector<1xf32>
    %80 = vector.shape_cast %79 : vector<1xf32> to vector<1x1xf32>
    %81 = math.log %80 : vector<1x1xf32>
    %82 = vector.broadcast %81 : vector<1x1xf32> to vector<1x40xf32>
    %83 = arith.subf %77, %82 : vector<1x40xf32>
    %c0_54 = arith.constant 0 : index
    %c0_55 = arith.constant 0 : index
    %84 = vector.load %arg11[%c0_54, %c0_55] : memref<1x40xf32, #tpu.memory_space<vmem>>, vector<1x40xf32>
    tpu.vector_store %arg11[%c0_54, %c0_55], %83 {strides = array<i32>} : memref<1x40xf32, #tpu.memory_space<vmem>>, vector<1x40xf32>,
    %c0_56 = arith.constant 0 : index
    %c0_57 = arith.constant 0 : index
    %85 = vector.load %arg12[%c0_56, %c0_57] : memref<1x32xf32, #tpu.memory_space<vmem>>, vector<1x32xf32>
    tpu.vector_store %arg12[%c0_56, %c0_57], %70 {strides = array<i32>} : memref<1x32xf32, #tpu.memory_space<vmem>>, vector<1x32xf32>,
    return
  }
}

</mosaic_0001>

<bundles_post_ra>
// kernel: tpu_custom_call.1
= control target key start
LH: loop header
LB: loop body
LE: loop exit
PB: predicated region body
PF: predicated region fallthrough
CT: control target
= control target key end

     0   :  { %19 = vsyncpa [#allocation3], 0  ;;  %s875_s0 = inlined_call_operand.vmem [shape: f32[1,32], index: 0, kind: input, shape index: {}]   ;;  %s876_s1 = inlined_call_operand.vmem [shape: f32[1,32], index: 1, kind: input, shape index: {}]   ;;  %s877_s2 = inlined_call_operand.vmem [shape: f32[8,32], index: 2, kind: input, shape index: {}]   ;;  %s878_s3 = inlined_call_operand.vmem [shape: f32[64,8], index: 3, kind: input, shape index: {}]   ;;  %s879_s4 = inlined_call_operand.vmem [shape: f32[1,8], index: 4, kind: input, shape index: {}]   ;;  %s880_s5 = inlined_call_operand.vmem [shape: f32[64,32], index: 5, kind: input, shape index: {}]   ;;  %s881_s6 = inlined_call_operand.vmem [shape: f32[1,32], index: 6, kind: input, shape index: {}]   ;;  %s882_s7 = inlined_call_operand.vmem [shape: f32[192,32], index: 7, kind: input, shape index: {}]   ;;  %s883_s8 = inlined_call_operand.vmem [shape: f32[4,32], index: 8, kind: input, shape index: {}]   ;;  %s884_s9 = inlined_call_operand.vmem [shape: f32[32,40], index: 9, kind: input, shape index: {}]   ;;  %s885_s10 = inlined_call_operand.vmem [shape: f32[1,40], index: 10, kind: input, shape index: {}]   ;;  %s886_s11 = inlined_call_operand.hbm [shape: f32[1,40], index: 11, kind: output, shape index: {0}]   ;;  %s887_s12 = inlined_call_operand.hbm [shape: f32[1,32], index: 12, kind: output, shape index: {1}]   ;;  %s888_s13 = inlined_call_operand.hbm [shape: f32[1,8], index: 13, kind: output, shape index: {2}]  }
   0x1   :  { %v60_v0 = vld [vmem:[%s878_s3 + $0x38] sm:$0xff]  ;;  %v59_v2 = vld [vmem:[%s878_s3 + $0x30] sm:$0xff]  ;;  %v58_v4 = vld [vmem:[%s878_s3 + $0x28] sm:$0xff] }
   0x2   :  { %v56_v1 = vld [vmem:[%s878_s3 + $0x18] sm:$0xff]  ;;  %77 = vmatpush.msra.mxu0 %v60_v0  ;;  %v55_v3 = vld [vmem:[%s878_s3 + $0x10] sm:$0xff]  ;;  %v54_v5 = vld [vmem:[%s878_s3 + $0x8] sm:$0xff] }
   0x3   :  { %100 = vmatpush.msra.mxu1 %v56_v1 }
   0x4   :  { %78 = vmatpush.msra.mxu0 %v59_v2 }
   0x5   :  { %101 = vmatpush.msra.mxu1 %v55_v3 }
   0x6   :  { %20 = vsyncpa [#allocation5], 0  ;;  %v57_v6 = vld [vmem:[%s878_s3 + $0x20] sm:$0xff]  ;;  %79 = vmatpush.msra.mxu0 %v58_v4  ;;  %vm61_vm0 = vcmask 261120   ;;  %vm109_vm1 = vcmask 57344   ;;  %v162_v22 = vld [vmem:[%s880_s5 + $0x18] sm:$0xff] }
   0x7   :  { %v53_v7 = vld [vmem:[%s878_s3] sm:$0xff]  ;;  %102 = vmatpush.msra.mxu1 %v54_v5  ;;  %v166_v23 = vld [vmem:[%s880_s5 + $0x38] sm:$0xff]  ;;  %v161_v24 = vld [vmem:[%s880_s5 + $0x10] sm:$0xff]  ;;  %vm135_vm6 = vcmask 64512   ;;  %vm447_vm15 = vcmask 253952   ;;  %s607_s21 = smov [#allocation4]  }
   0x8   :  { %v707_v8 = vld [vmem:[%s876_s1] sm:$0x1]  ;;  %80 = vmatpush.msra.mxu0 %v57_v6  ;;  %182 = vmatpush.msra.mxu3 %v166_v23  ;;  %v165_v25 = vld [vmem:[%s880_s5 + $0x30] sm:$0xff]  ;;  %v160_v26 = vld [vmem:[%s880_s5 + $0x8] sm:$0xff]  ;;  %s465_s22 = sshll.u32 %s607_s21, 4  ;;  %s467_s25 = sshll.u32 %s887_s12, 4  ;;  %s466_s22 = int_to_ptr.vmem [resolvable:$true] %s465_s22  ;;  %s468_s25 = int_to_ptr.hbm [resolvable:$true] %s467_s25 }
   0x9   :  { %v43_v9 = vld [vmem:[%s875_s0] sm:$0x1]  ;;  %103 = vmatpush.msra.mxu1 %v53_v7  ;;  %496 = vmatmul.msk.f32.vlgmr.msra.gmra.mxu0 %vm61_vm0, %v707_v8  ;;  %v164_v27 = vld [vmem:[%s880_s5 + $0x28] sm:$0xff]  ;;  %v219_v42 = vld [vmem:[%s882_s7 + $0x78] sm:$0xff]  ;;  %s478_s28 = sshll.u32 %s888_s13, 4  ;;  %s456_s1 = sshll.u32 %s886_s11, 4  ;;  %s479_s28 = int_to_ptr.hbm [resolvable:$true] %s478_s28  ;;  %s457_s1 = int_to_ptr.hbm [resolvable:$true] %s456_s1 }
   0xa   :  { %497 = vmatmul.msk.f32.vlgmr.msra.gmra.mxu1 %vm61_vm0, %v43_v9  ;;  %v45_v12 = vld [vmem:[%s879_s4] sm:$0x1]  ;;  %183 = vmatpush.msra.mxu3 %v165_v25  ;;  %v218_v43 = vld [vmem:[%s882_s7 + $0x70] sm:$0xff]  ;;  %v215_v44 = vld [vmem:[%s882_s7 + $0x18] sm:$0xff] }
   0xb   :  { %v44_v21 = vld [vmem:[%s877_s2] sm:$0xff]  ;;  %232 = vmatpush.msrb.mxu0 %v219_v42  ;;  %v217_v45 = vld [vmem:[%s882_s7 + $0x68] sm:$0xff]  ;;  %255 = vmatpush.msrb.mxu1 %v215_v44  ;;  %v290_v48 = vld [vmem:[%s882_s7 + $0x98] sm:$0xff] }
   0xc   :  { %154 = vmatpush.msra.mxu2 %v44_v21  ;;  %v159_v28 = vld [vmem:[%s880_s5] sm:$0xff]  ;;  %184 = vmatpush.msra.mxu3 %v164_v27  ;;  %v286_v49 = vld [vmem:[%s882_s7 + $0x38] sm:$0xff]  ;;  %v214_v51 = vld [vmem:[%s882_s7 + $0x10] sm:$0xff] }
   0xd   :  { %v163_v41 = vld [vmem:[%s880_s5 + $0x20] sm:$0xff]  ;;  %233 = vmatpush.msrb.mxu0 %v218_v43  ;;  %v354_v50 = vld [vmem:[%s882_s7 + $0x58] sm:$0xff]  ;;  %v289_v52 = vld [vmem:[%s882_s7 + $0x90] sm:$0xff]  ;;  %256 = vmatpush.msrb.mxu1 %v214_v51 }
   0xe   :  { %202 = vmatpush.msrb.mxu2 %v162_v22  ;;  %185 = vmatpush.msra.mxu3 %v163_v41  ;;  %v216_v46 = vld [vmem:[%s882_s7 + $0x60] sm:$0xff]  ;;  %v285_v53 = vld [vmem:[%s882_s7 + $0x30] sm:$0xff]  ;;  %v213_v55 = vld [vmem:[%s882_s7 + $0x8] sm:$0xff] }
   0xf   :  { %234 = vmatpush.msrb.mxu0 %v217_v45  ;;  %v353_v54 = vld [vmem:[%s882_s7 + $0x50] sm:$0xff]  ;;  %v288_v56 = vld [vmem:[%s882_s7 + $0x88] sm:$0xff]  ;;  %257 = vmatpush.msrb.mxu1 %v213_v55  ;;  %v212_v59 = vld [vmem:[%s882_s7] sm:$0xff] }
  0x10   :  { %203 = vmatpush.msrb.mxu2 %v161_v24  ;;  %303 = vmatpush.msrb.mxu3 %v290_v48  ;;  %v284_v57 = vld [vmem:[%s882_s7 + $0x28] sm:$0xff]  ;;  %v287_v60 = vld [vmem:[%s882_s7 + $0x80] sm:$0xff]  ;;  %v378_v63 = vld [vmem:[%s882_s7 + $0xb8] sm:$0xff] }
  0x11   :  { %235 = vmatpush.msrb.mxu0 %v216_v46  ;;  %v352_v58 = vld [vmem:[%s882_s7 + $0x48] sm:$0xff]  ;;  %v283_v61 = vld [vmem:[%s882_s7 + $0x20] sm:$0xff]  ;;  %258 = vmatpush.msrb.mxu1 %v212_v59  ;;  %v377_v0 = vld [vmem:[%s882_s7 + $0xb0] sm:$0xff] }
  0x12   :  { %204 = vmatpush.msrb.mxu2 %v160_v26  ;;  %501 = vmatmul.msk.f32.vlgmr.msrb.gmra.mxu0 %vm61_vm0, %v707_v8  ;;  %v351_v62 = vld [vmem:[%s882_s7 + $0x40] sm:$0xff]  ;;  %v376_v1 = vld [vmem:[%s882_s7 + $0xa8] sm:$0xff]  ;;  %v409_v21 = vld [vmem:[%s884_s9 + $0x18] sm:$0xff] }
  0x13   :  { %367 = vmatpush.msra.mxu0 %v354_v50  ;;  %304 = vmatpush.msrb.mxu3 %v289_v52  ;;  %v375_v2 = vld [vmem:[%s882_s7 + $0xa0] sm:$0xff]  ;;  %v408_v23 = vld [vmem:[%s884_s9 + $0x10] sm:$0xff]  ;;  %v407_v24 = vld [vmem:[%s884_s9 + $0x8] sm:$0xff]  ;;  %s609_s7 = smov [#allocation2]  }
  0x14   :  { %205 = vmatpush.msrb.mxu2 %v159_v28  ;;  %391 = vmatpush.msra.mxu1 %v378_v63  ;;  %v46_v5 = vld [vmem:[%s881_s6] sm:$0x1]  ;;  %s454_s12 = sshll.u32 %s609_s7, 4  ;;  %s455_s12 = int_to_ptr.vmem [resolvable:$true] %s454_s12 }
  0x15   :  { %368 = vmatpush.msra.mxu0 %v353_v54  ;;  %305 = vmatpush.msrb.mxu3 %v288_v56  ;;  %v406_v26 = vld [vmem:[%s884_s9] sm:$0xff] }
  0x16   :  { %392 = vmatpush.msra.mxu1 %v377_v0  ;;  %v51_v63 = vld [vmem:[%s885_s10] sm:$0x1]  ;;  %s608_s10 = smov [#allocation6]  }
  0x17   :  { %369 = vmatpush.msra.mxu0 %v352_v58  ;;  %306 = vmatpush.msrb.mxu3 %v287_v60  ;;  %s476_s26 = sshll.u32 %s608_s10, 4  ;;  %s477_s26 = int_to_ptr.vmem [resolvable:$true] %s476_s26 }
  0x18   :  { %393 = vmatpush.msra.mxu1 %v376_v1 }
  0x19   :  { %370 = vmatpush.msra.mxu0 %v351_v62 }
  0x1a   :  { %394 = vmatpush.msra.mxu1 %v375_v2 }
  0x86   :  { %v82_v10 = vpop.f32.mrf.mxu0 }
  0x87   :  { %v105_v11 = vpop.f32.mrf.mxu1 }
  0x88   :  { %v106_v13 = vadd.f32 %v105_v11, %v82_v10  ;;  %v47_v11 = vld [vmem:[%s883_s8] sm:$0x1] }
  0x8a   :  { %v108_v14 = vadd.f32 %v106_v13, %v45_v12 }
  0x8c   :  { %v110_v15 = vsel %vm109_vm1, %v108_v14, -inf }
  0x8d   :  { %111 = vmax.xlane.f32.xlu0 %v110_v15 }
  0x8f   :  { %v237_v10 = vpop.f32.mrf.mxu0 }
 0x100   :  { %v112_v16 = vpop.xlane.xlu0 %111 }
 0x101   :  { %v113_v17 = vsub.f32 %v108_v14, %v112_v16 }
 0x103   :  { %v114_v18 = vmul.f32 1.442695, %v113_v17  ;;  %v48_v17 = vld [vmem:[%s883_s8 + $0x1] sm:$0x1] }
 0x105   :  { %513 = vpow2.f32 %v114_v18 }
 0x10b   :  { %v514_v19 = vpop.eup %513 }
 0x10c   :  { %v116_v20 = vsel %vm109_vm1, %v514_v19, 0.0 }
 0x10d   :  { %117 = vadd.xlane.f32.xlu0 %v116_v20 }
 0x180   :  { %v118_v29 = vpop.xlane.xlu0 %117 }
 0x181   :  { %515 = vrcp.f32 %v118_v29  ;;  %v130_v33 = vand.u32 2147483648, %v118_v29  ;;  %v128_v35 = vand.u32 2147483647, %v118_v29  ;;  %vm124_vm3 = vweird.f32 %v118_v29 }
 0x183   :  { %v131_v37 = vor.u32 1.1754944e-38, %v130_v33  ;;  %vm129_vm5 = vcmp.eq.f32.partialorder %v128_v35, 8.507059e+37  ;;  %v50_v33 = vld [vmem:[%s883_s8 + $0x3] sm:$0x1] }
 0x187   :  { %v516_v30 = vpop.eup %515 }
 0x188   :  { %v120_v31 = vmul.f32 %v516_v30, %v118_v29  ;;  %vm125_vm2 = vweird.f32 %v516_v30 }
 0x189   :  { %vm126_vm4 = vmor %vm124_vm3, %vm125_vm2 }
 0x18a   :  { %v121_v32 = vsub.f32 1.0, %v120_v31 }
 0x18c   :  { %v122_v34 = vmul.f32 %v516_v30, %v121_v32 }
 0x18e   :  { %v123_v36 = vadd.f32 %v516_v30, %v122_v34 }
 0x190   :  { %v127_v38 = vsel %vm126_vm4, %v516_v30, %v123_v36 }
 0x191   :  { %v132_v39 = vsel %vm129_vm5, %v131_v37, %v127_v38 }
 0x192   :  { %v133_v40 = vmul.f32 %v514_v19, %v132_v39  ;;  %v49_v39 = vld [vmem:[%s883_s8 + $0x2] sm:$0x1] }
 0x194   :  { %498 = vmatmul.msk.f32.vlgmr.msra.gmra.mxu2 %vm135_vm6, %v133_v40  ;;  %134 = vst.msk [vmem:[#allocation6] sm:$0x1] %vm109_vm1, %v133_v40  ;;  %vm433_vm1 = vcmask 319488  }
 0x195   :  { %323 = vmatpush.msra.mxu2 %v286_v49 }
 0x197   :  { %324 = vmatpush.msra.mxu2 %v285_v53 }
 0x199   :  { %325 = vmatpush.msra.mxu2 %v284_v57 }
 0x19b   :  { %326 = vmatpush.msra.mxu2 %v283_v61 }
 0x19c   :  { %500 = vmatmul.msk.f32.vlgmr.msrb.gmra.mxu2 %vm61_vm0, %v43_v9 }
 0x217   :  { %v156_v47 = vpop.f32.mrf.mxu2 }
 0x218   :  { %499 = vmatmul.msk.f32.vlgmr.msra.gmra.mxu3 %vm61_vm0, %v156_v47 }
 0x219   :  { %425 = vmatpush.msra.mxu3 %v409_v21 }
 0x21b   :  { %426 = vmatpush.msra.mxu3 %v408_v23 }
 0x21d   :  { %427 = vmatpush.msra.mxu3 %v407_v24 }
 0x21f   :  { %v207_v3 = vpop.f32.mrf.mxu2  ;;  %428 = vmatpush.msra.mxu3 %v406_v26 }
 0x220   :  { %504 = vmatmul.msk.f32.vlgmr.msrb.gmra.mxu3 %vm61_vm0, %v707_v8 }
 0x29b   :  { %v187_v4 = vpop.f32.mrf.mxu3 }
 0x29c   :  { %v208_v6 = vadd.f32 %v207_v3, %v187_v4 }
 0x29e   :  { %v210_v7 = vadd.f32 %v208_v6, %v46_v5 }
 0x2a0   :  { %v211_v9 = vmax.f32 %v210_v7, 0.0 }
 0x2a2   :  { %502 = vmatmul.msk.f32.vlgmr.msrb.gmra.mxu1 %vm61_vm0, %v211_v9  ;;  %505 = vmatmul.msk.f32.vlgmr.msra.gmra.mxu2 %vm61_vm0, %v211_v9 }
 0x2a3   :  { %507 = vmatmul.msk.f32.vlgmr.msra.gmra.mxu0 %vm61_vm0, %v211_v9  ;;  %v308_v15 = vpop.f32.mrf.mxu3 }
 0x2aa   :  { %508 = vmatmul.msk.f32.vlgmr.msra.gmra.mxu1 %vm61_vm0, %v707_v8 }
 0x31f   :  { %v260_v12 = vpop.f32.mrf.mxu1 }
 0x320   :  { %v261_v13 = vadd.f32 %v260_v12, %v237_v10  ;;  %v372_v40 = vpop.f32.mrf.mxu0 }
 0x321   :  { %v373_v47 = vadd.f32 %v372_v40, %v49_v39 }
 0x322   :  { %v263_v14 = vadd.f32 %v261_v13, %v47_v11 }
 0x324   :  { %v503_v16 = vmul.f32 -1.442695, %v263_v14 }
 0x325   :  { %v328_v18 = vpop.f32.mrf.mxu2 }
 0x326   :  { %517 = vpow2.f32 %v503_v16  ;;  %v329_v19 = vadd.f32 %v328_v18, %v308_v15 }
 0x327   :  { %v396_v35 = vpop.f32.mrf.mxu1 }
 0x328   :  { %v331_v20 = vadd.f32 %v329_v19, %v48_v17  ;;  %v397_v43 = vadd.f32 %v396_v35, %v50_v33 }
 0x32a   :  { %v506_v22 = vmul.f32 -1.442695, %v331_v20 }
 0x32c   :  { %v518_v25 = vpop.eup %517  ;;  %519 = vpow2.f32 %v506_v22 }
 0x32d   :  { %v267_v27 = vadd.f32 1.0, %v518_v25 }
 0x32f   :  { %521 = vrcp.f32 %v267_v27  ;;  %v279_v34 = vand.u32 2147483648, %v267_v27  ;;  %v277_v37 = vand.u32 2147483647, %v267_v27  ;;  %vm273_vm8 = vweird.f32 %v267_v27 }
 0x331   :  { %v280_v44 = vor.u32 1.1754944e-38, %v279_v34  ;;  %vm278_vm10 = vcmp.eq.f32.partialorder %v277_v37, 8.507059e+37 }
 0x332   :  { %v520_v28 = vpop.eup %519 }
 0x333   :  { %v335_v29 = vadd.f32 1.0, %v520_v28 }
 0x335   :  { %v522_v30 = vpop.eup %521  ;;  %523 = vrcp.f32 %v335_v29  ;;  %v347_v50 = vand.u32 2147483648, %v335_v29  ;;  %v345_v52 = vand.u32 2147483647, %v335_v29  ;;  %vm341_vm12 = vweird.f32 %v335_v29 }
 0x336   :  { %v269_v31 = vmul.f32 %v522_v30, %v267_v27  ;;  %vm274_vm7 = vweird.f32 %v522_v30 }
 0x337   :  { %vm275_vm9 = vmor %vm273_vm8, %vm274_vm7  ;;  %v348_v55 = vor.u32 1.1754944e-38, %v347_v50  ;;  %vm346_vm14 = vcmp.eq.f32.partialorder %v345_v52, 8.507059e+37 }
 0x338   :  { %v270_v32 = vsub.f32 1.0, %v269_v31 }
 0x33a   :  { %v271_v36 = vmul.f32 %v522_v30, %v270_v32 }
 0x33b   :  { %v524_v38 = vpop.eup %523 }
 0x33c   :  { %v337_v41 = vmul.f32 %v524_v38, %v335_v29  ;;  %v272_v42 = vadd.f32 %v522_v30, %v271_v36  ;;  %vm342_vm11 = vweird.f32 %v524_v38 }
 0x33d   :  { %vm343_vm13 = vmor %vm341_vm12, %vm342_vm11 }
 0x33e   :  { %v338_v45 = vsub.f32 1.0, %v337_v41  ;;  %v276_v46 = vsel %vm275_vm9, %v522_v30, %v272_v42 }
 0x33f   :  { %v281_v48 = vsel %vm278_vm10, %v280_v44, %v276_v46 }
 0x340   :  { %v339_v49 = vmul.f32 %v524_v38, %v338_v45  ;;  %v399_v51 = vmul.f32 %v397_v43, %v281_v48 }
 0x342   :  { %v340_v53 = vadd.f32 %v524_v38, %v339_v49  ;;  %v400_v54 = vadd.f32 %v399_v51, %v373_v47 }
 0x344   :  { %v344_v56 = vsel %vm343_vm13, %v524_v38, %v340_v53  ;;  %525 = vtanh.f32 %v400_v54 }
 0x345   :  { %v349_v57 = vsel %vm346_vm14, %v348_v55, %v344_v56 }
 0x346   :  { %v402_v58 = vsub.f32 1.0, %v349_v57  ;;  %v404_v61 = vmul.f32 %v349_v57, %v707_v8 }
 0x34a   :  { %v526_v59 = vpop.eup %525 }
 0x34b   :  { %v403_v60 = vmul.f32 %v526_v59, %v402_v58 }
 0x34d   :  { %v405_v62 = vadd.f32 %v404_v61, %v403_v60 }
 0x34f   :  { %509 = vmatmul.msk.f32.vlgmr.msra.gmra.mxu3 %vm61_vm0, %v405_v62  ;;  %448 = vst.msk [vmem:[#allocation4] sm:$0x1] %vm447_vm15, %v405_v62 }
 0x350   :  { %470 = dma.vmem_to_hbm [thread:$0]  %s466_s22, 16, %s468_s25, [#allocation5]  }
 0x351   :  { %481 = dma.vmem_to_hbm [thread:$0]  %s477_s26, 16, %s479_s28, [#allocation5]  }
 0x3d2   :  { %v430_v0 = vpop.f32.mrf.mxu3 }
 0x3d3   :  { %v431_v1 = vadd.f32 %v430_v0, %v51_v63 }
 0x3d5   :  { %v434_v2 = vsel %vm433_vm1, %v431_v1, -inf }
 0x3d6   :  { %435 = vmax.xlane.f32.xlu1 %v434_v2 }
 0x449   :  { %v436_v3 = vpop.xlane.xlu1 %435 }
 0x44a   :  { %v437_v4 = vsub.f32 %v431_v1, %v436_v3 }
 0x44c   :  { %v438_v5 = vmul.f32 1.442695, %v437_v4 }
 0x44e   :  { %527 = vpow2.f32 %v438_v5 }
 0x454   :  { %v528_v8 = vpop.eup %527 }
 0x455   :  { %v440_v6 = vsel %vm433_vm1, %v528_v8, 0.0 }
 0x456   :  { %441 = vadd.xlane.f32.xlu1 %v440_v6 }
 0x4c9   :  { %v442_v7 = vpop.xlane.xlu1 %441 }
 0x4ca   :  { %529 = vlog2.f32 %v442_v7 }
 0x4d0   :  { %v530_v9 = vpop.eup %529 }
 0x4d1   :  { %v444_v10 = vmul.f32 0.6931472, %v530_v9 }
 0x4d3   :  { %v445_v11 = vsub.f32 %v437_v4, %v444_v10 }
 0x4d5   :  { %446 = vst.msk [vmem:[#allocation2] sm:$0x1] %vm433_vm1, %v445_v11 }
 0x4d6   :  { %459 = dma.vmem_to_hbm [thread:$0]  %s455_s12, 16, %s457_s1, [#allocation3]  }
 0x4d7   :  { %603 = dma.done.wait [#allocation3], 16  }
 0x4d8   :  { %604 = vsyncadd [#allocation3], 4294967280 }
 0x4d9   :  { %605 = dma.done.wait [#allocation5], 32  }
 0x4da   :  { %606 = vsyncadd [#allocation5], 4294967264 }
 0x4db   :  { %494 = vsyncpa [#allocation3], 1 }
 0x4dc   :  { %495 = vsyncpa [#allocation5], 1 }

</bundles_post_ra>
